<compile_context>
chip_gen: v6e
topology: v6e:2x2x1
jax: 0.10.0
libtpu: 0.0.40
codegen_flags: <defaults>
</compile_context>

<pallas_src>
import numpy as np

import jax
import jax.numpy as jnp
from jax import lax
from jax.experimental import pallas as pl
from jax.experimental.pallas import tpu as pltpu


# ----------------------------------------------------------------------------
# Trace-time constant / weight preparation (tiny, plain numpy + JAX)
# ----------------------------------------------------------------------------
def _upsample_matrix(n: int) -> np.ndarray:
    """(2n, n) matrix for 2x bilinear upsample, align_corners=False."""
    i = np.arange(2 * n)
    src = (i + 0.5) / 2.0 - 0.5
    j0 = np.floor(src).astype(np.int64)
    frac = (src - j0).astype(np.float32)
    j0c = np.clip(j0, 0, n - 1)
    j1c = np.clip(j0 + 1, 0, n - 1)
    u = np.zeros((2 * n, n), np.float32)
    u[i, j0c] += (1.0 - frac)
    u[i, j1c] += frac
    return u          # entries in {0, 0.25, 0.75, 1.0} -> exact in bf16


def _toeplitz_stack(w_hwio, W: int):
    """(3,3,Cin,Cout) conv weight -> (3, W*Cin, W*Cout) block-Toeplitz stack.

    Entry [dy, wi*Cin + c, wo*Cout + co] = w[dy, dx, c, co] for wi = wo+dx-1;
    out-of-range wi are dropped, i.e. the pad=1 zero padding along W is
    encoded in the matrix itself.
    """
    _, _, Cin, Cout = w_hwio.shape
    sel = np.zeros((3, W, W), np.float32)          # sel[dx, wi, wo]
    for dx in range(3):
        for wo in range(W):
            wi = wo + dx - 1
            if 0 <= wi < W:
                sel[dx, wi, wo] = 1.0
    t = jnp.einsum("dxw,ydco->yxcwo", jnp.asarray(sel),
                   w_hwio.astype(jnp.float32))     # (3, W, Cin, W, Cout)
    return t.reshape(3, W * Cin, W * Cout)


def fold_bn(conv_b, gamma, beta, running_mean, running_var, eps=1e-5):
    scale = gamma / jnp.sqrt(running_var + eps)
    bias = (conv_b - running_mean) * scale + beta
    return scale, bias


def _num_batch_blocks(N: int) -> int:
    """2 grid steps on chips with 2 TensorCores per device (v7x), else 1."""
    try:
        n_tc = int(getattr(jax.devices()[0], "num_cores", 1) or 1)
    except Exception:                               # pragma: no cover
        n_tc = 1
    return 2 if (n_tc >= 2 and N >= 2 and N % 2 == 0) else 1


# ----------------------------------------------------------------------------
# Pallas kernel: fused upsample + concat + conv1+BN+ReLU + conv2+BN+ReLU
# ----------------------------------------------------------------------------
def _unet_up2_ct_kernel(x1_ref, x2_ref, uh_ref, mprev_ref, mnext_ref,
                        w1_ref, w2_ref, b1_ref, b2_ref, o_ref):
    # Shapes (M = batch_block*H rows, channels fused into lanes):
    #   x1_ref : (M, W*C1)   f32   skip connection
    #   x2_ref : (Mh, Wh*C2) f32   deep features (Mh = batch_block*H/2)
    #   uh_ref : (3, M, Mh)  bf16  row-upsample operators, one per conv1 dy tap
    #                              (dy row shift + per-sample block-diag baked in)
    #   mprev_ref, mnext_ref : (M, 1) f32  sample-boundary masks for the row taps
    #   w1_ref : (3*W*C1 + 3*Wh*C2, W*Cout) bf16  conv1 (BN + col-upsample folded)
    #   w2_ref : (3*W*Cout, W*Cout)         bf16  conv2 (BN folded)
    #   b1_ref, b2_ref : (1, W*Cout) f32    folded BN biases, tiled over W
    #   o_ref  : (M, W*Cout) f32
    mprev = mprev_ref[...]          # 0 on each sample's first row, else 1
    mnext = mnext_ref[...]          # 0 on each sample's last row,  else 1

    def tap_prev(x):                # out[r] = x[r-1] within a sample, 0 at row 0
        return pltpu.roll(x, shift=1, axis=0) * mprev

    def tap_next(x):                # out[r] = x[r+1] within a sample, 0 at row H-1
        return pltpu.roll(x, shift=x.shape[0] - 1, axis=0) * mnext

    x1 = x1_ref[...]                                        # (M, W*C1) f32
    x2 = x2_ref[...].astype(jnp.bfloat16)                   # (Mh, Wh*C2)

    # 2x bilinear row-upsample fused with conv1's dy row taps (the column
    # upsample is folded into w1 at trace time) -- `up2` is never materialized.
    u = [jnp.dot(uh_ref[dy], x2, preferred_element_type=jnp.float32)
         for dy in range(3)]                                # 3 x (M, Wh*C2) f32

    # conv1 (+ folded BN) + ReLU: channel concat and the 3 dy taps realized as
    # ONE wide-K dot (K = 3*W*C1 + 3*Wh*C2).
    xcat = jnp.concatenate([tap_prev(x1), x1, tap_next(x1)] + u, axis=-1)
    h1 = jnp.dot(xcat.astype(jnp.bfloat16), w1_ref[...],
                 preferred_element_type=jnp.float32)
    h1 = jnp.maximum(h1 + b1_ref[...], 0.0)                 # (M, W*Cout) f32

    # conv2 (+ folded BN) + ReLU: ONE wide-K dot (K = 3*W*Cout).
    hcat = jnp.concatenate([tap_prev(h1), h1, tap_next(h1)], axis=-1)
    h2 = jnp.dot(hcat.astype(jnp.bfloat16), w2_ref[...],
                 preferred_element_type=jnp.float32)
    o_ref[...] = jnp.maximum(h2 + b2_ref[...], 0.0)


# ----------------------------------------------------------------------------
# Full UnetUp2_CT forward (external API is NCHW, like PyTorch)
# ----------------------------------------------------------------------------
def unet_up2_ct_forward(inputs1_nchw, inputs2_nchw, params, *, num_batch_blocks=None):
    # NOTE: the NCHW<->NHWC transposes below are layout plumbing for the
    # PyTorch-shaped API; when chaining UNet modules, keep activations in the
    # lane-fused (N*H, W*C) layout between modules and drop them.
    x1 = jnp.transpose(inputs1_nchw, (0, 2, 3, 1)).astype(jnp.float32)   # NHWC
    x2 = jnp.transpose(inputs2_nchw, (0, 2, 3, 1)).astype(jnp.float32)   # NHWC
    N, Hh, Wh, C2 = x2.shape
    H, W = 2 * Hh, 2 * Wh

    offset = H - x1.shape[1]
    if offset != 0 or x1.shape[2] != W:
        # TODO(synk): the PyTorch module's F.pad for offset>0 also pads the
        # channel dim, which is incompatible with conv1's in_channels; only
        # offset==0 is meaningful, so guard explicitly instead of mis-padding.
        raise NotImplementedError("UnetUp2_CT Pallas kernel supports offset == 0 only")
    C1 = x1.shape[-1]
    Cout = params["conv1_w"].shape[-1]
    assert params["conv1_w"].shape[2] == C1 + C2, "concat channels mismatch conv1_w"
    # TODO(synk): block-Toeplitz weights are O((W*C)^2) and only ~3/W of that is
    # useful MXU work; for real UNet stages (W>=64, C>=32) tile W along a grid
    # axis (or switch to per-tap dense weights + a lane roll) before this
    # exceeds VMEM -- v7x (64 MiB physical) hits that wall first.

    # ---- grid: fold batch into matmul M; 2 parallel blocks on 2-TC chips ----
    G = num_batch_blocks or _num_batch_blocks(N)
    if N % G:
        G = 1
    bN = N // G
    M, Mh = bN * H, bN * Hh

    # ---- fold BN(eval) into conv weights / lane-dense bias rows ----
    s1, b1 = fold_bn(params["conv1_b"], params["bn1_gamma"], params["bn1_beta"],
                     params["bn1_mean"], params["bn1_var"])
    s2, b2 = fold_bn(params["conv2_b"], params["bn2_gamma"], params["bn2_beta"],
                     params["bn2_mean"], params["bn2_var"])
    w1_eff = params["conv1_w"].astype(jnp.float32) * s1
    w2_eff = params["conv2_w"].astype(jnp.float32) * s2

    # Block-Toeplitz (conv-as-matmul along W); dy taps stacked along K so each
    # conv is ONE wide-K MXU dot inside the kernel.
    t1a = _toeplitz_stack(w1_eff[:, :, :C1, :], W)      # (3, W*C1,  W*Cout) skip
    t1b = _toeplitz_stack(w1_eff[:, :, C1:, :], W)      # (3, W*C2,  W*Cout) up branch
    t2 = _toeplitz_stack(w2_eff, W)                     # (3, W*Cout, W*Cout)

    # Fold the column-upsample kron(U_W, I_C2) into the conv1 up-branch weights.
    mwt = jnp.asarray(np.kron(_upsample_matrix(Wh),
                              np.eye(C2, dtype=np.float32)).T)   # (Wh*C2, W*C2)
    t1b_up = jnp.einsum("kc,ycn->ykn", mwt, t1b)                 # (3, Wh*C2, W*Cout)

    w1 = jnp.concatenate(
        [t1a.reshape(3 * W * C1, W * Cout),
         t1b_up.reshape(3 * Wh * C2, W * Cout)], axis=0).astype(jnp.bfloat16)
    w2 = t2.reshape(3 * W * Cout, W * Cout).astype(jnp.bfloat16)
    b1t = jnp.tile(b1.astype(jnp.float32), W).reshape(1, W * Cout)
    b2t = jnp.tile(b2.astype(jnp.float32), W).reshape(1, W * Cout)

    # Row-upsample operators, one per conv1 dy tap: the dy row shift and the
    # per-sample block-diagonal (batch folded into M) are baked in at trace time.
    uh = _upsample_matrix(Hh)                                   # (H, Hh)
    zrow = np.zeros((1, Hh), np.float32)
    uh_dy = [np.concatenate([zrow, uh[:-1]], 0),                # uses input row h-1
             uh,                                                # row h
             np.concatenate([uh[1:], zrow], 0)]                 # row h+1
    eye_b = np.eye(bN, dtype=np.float32)
    uh3 = jnp.asarray(np.stack([np.kron(eye_b, m) for m in uh_dy], 0),
                      dtype=jnp.bfloat16)                       # (3, M, Mh), exact in bf16

    # Sample-boundary masks for the in-kernel sublane rolls.
    mprev_np = np.ones((bN, H, 1), np.float32); mprev_np[:, 0, :] = 0.0
    mnext_np = np.ones((bN, H, 1), np.float32); mnext_np[:, -1, :] = 0.0
    mprev = jnp.asarray(mprev_np.reshape(M, 1))
    mnext = jnp.asarray(mnext_np.reshape(M, 1))

    # Lane-fused, batch-folded activation layouts (free row-major collapses).
    x1f = x1.reshape(N * H, W * C1)
    x2f = x2.reshape(N * Hh, Wh * C2)

    # NOTE: the weight/constant BlockSpecs are revisited every step; at real
    # UNet sizes single-buffer them (pipeline_mode) to halve their VMEM.
    out_f = pl.pallas_call(
        _unet_up2_ct_kernel,
        out_shape=jax.ShapeDtypeStruct((N * H, W * Cout), jnp.float32),
        grid=(G,),
        in_specs=[
            pl.BlockSpec((M, W * C1), lambda g: (g, 0)),
            pl.BlockSpec((Mh, Wh * C2), lambda g: (g, 0)),
            pl.BlockSpec((3, M, Mh), lambda g: (0, 0, 0)),
            pl.BlockSpec((M, 1), lambda g: (0, 0)),
            pl.BlockSpec((M, 1), lambda g: (0, 0)),
            pl.BlockSpec((3 * W * C1 + 3 * Wh * C2, W * Cout), lambda g: (0, 0)),
            pl.BlockSpec((3 * W * Cout, W * Cout), lambda g: (0, 0)),
            pl.BlockSpec((1, W * Cout), lambda g: (0, 0)),
            pl.BlockSpec((1, W * Cout), lambda g: (0, 0)),
        ],
        out_specs=pl.BlockSpec((M, W * Cout), lambda g: (g, 0)),
        compiler_params=pltpu.CompilerParams(
            dimension_semantics=("parallel",),      # v7x: shard batch blocks over 2 TCs
            vmem_limit_bytes=32 * 1024 * 1024),
    )(x1f, x2f, uh3, mprev, mnext, w1, w2, b1t, b2t)

    out = out_f.reshape(N, H, W, Cout)              # free layout plumbing
    return jnp.transpose(out, (0, 3, 1, 2))         # back to NCHW


# ----------------------------------------------------------------------------
# Pure-JAX reference (for correctness check)
# ----------------------------------------------------------------------------
def _upsample2x_bilinear_ref(x):   # x: (N, H, W, C)
    def up_axis(v, axis):
        n = v.shape[axis]
        prev = jnp.concatenate([lax.slice_in_dim(v, 0, 1, axis=axis),
                                lax.slice_in_dim(v, 0, n - 1, axis=axis)], axis=axis)
        nxt = jnp.concatenate([lax.slice_in_dim(v, 1, n, axis=axis),
                               lax.slice_in_dim(v, n - 1, n, axis=axis)], axis=axis)
        even = 0.25 * prev + 0.75 * v
        odd = 0.75 * v + 0.25 * nxt
        stacked = jnp.stack([even, odd], axis=axis + 1)
        new_shape = list(v.shape)
        new_shape[axis] = 2 * n
        return stacked.reshape(new_shape)
    return up_axis(up_axis(x, 1), 2)


def _ref_conv_bn_relu(x_nhwc, w_hwio, scale, bias):
    y = lax.conv_general_dilated(
        x_nhwc, w_hwio, window_strides=(1, 1), padding="SAME",
        dimension_numbers=("NHWC", "HWIO", "NHWC"), precision="highest")
    return jnp.maximum(y * scale + bias, 0.0)


def _ref_forward(inputs1_nchw, inputs2_nchw, params):
    x1 = jnp.transpose(inputs1_nchw, (0, 2, 3, 1)).astype(jnp.float32)
    x2 = jnp.transpose(inputs2_nchw, (0, 2, 3, 1)).astype(jnp.float32)
    up2 = _upsample2x_bilinear_ref(x2)
    cat = jnp.concatenate([x1, up2], axis=-1)
    s1, b1 = fold_bn(params["conv1_b"], params["bn1_gamma"], params["bn1_beta"],
                     params["bn1_mean"], params["bn1_var"])
    s2, b2 = fold_bn(params["conv2_b"], params["bn2_gamma"], params["bn2_beta"],
                     params["bn2_mean"], params["bn2_var"])
    h = _ref_conv_bn_relu(cat, params["conv1_w"], s1, b1)
    h = _ref_conv_bn_relu(h, params["conv2_w"], s2, b2)
    return jnp.transpose(h, (0, 3, 1, 2))


# ----------------------------------------------------------------------------
# Main
# ----------------------------------------------------------------------------
if __name__ == "__main__":
    key = jax.random.PRNGKey(0)
    in_size, out_size = 4, 8
    N, H, W = 2, 16, 16

    k = jax.random.split(key, 16)
    # inputs1: skip connection (out_size channels, full resolution)
    # inputs2: deeper feature map (in_size channels, half resolution) -> upsampled
    inputs1 = jax.random.normal(k[0], (N, out_size, H, W), jnp.float32)
    inputs2 = jax.random.normal(k[1], (N, in_size, H // 2, W // 2), jnp.float32)

    cin1 = in_size + out_size
    # PyTorch conv weight is OIHW -> transpose to HWIO.
    params = {
        "conv1_w": jnp.transpose(
            0.1 * jax.random.normal(k[2], (out_size, cin1, 3, 3), jnp.float32),
            (2, 3, 1, 0)),
        "conv1_b": 0.05 * jax.random.normal(k[3], (out_size,), jnp.float32),
        "bn1_gamma": 1.0 + 0.1 * jax.random.normal(k[4], (out_size,), jnp.float32),
        "bn1_beta": 0.1 * jax.random.normal(k[5], (out_size,), jnp.float32),
        "bn1_mean": 0.1 * jax.random.normal(k[6], (out_size,), jnp.float32),
        "bn1_var": 0.5 + jnp.abs(jax.random.normal(k[7], (out_size,), jnp.float32)),
        "conv2_w": jnp.transpose(
            0.1 * jax.random.normal(k[8], (out_size, out_size, 3, 3), jnp.float32),
            (2, 3, 1, 0)),
        "conv2_b": 0.05 * jax.random.normal(k[9], (out_size,), jnp.float32),
        "bn2_gamma": 1.0 + 0.1 * jax.random.normal(k[10], (out_size,), jnp.float32),
        "bn2_beta": 0.1 * jax.random.normal(k[11], (out_size,), jnp.float32),
        "bn2_mean": 0.1 * jax.random.normal(k[12], (out_size,), jnp.float32),
        "bn2_var": 0.5 + jnp.abs(jax.random.normal(k[13], (out_size,), jnp.float32)),
    }

    out = jax.block_until_ready(
        jax.jit(unet_up2_ct_forward)(inputs1, inputs2, params))
    assert out.shape == (N, out_size, H, W), out.shape

    ref = jax.block_until_ready(
        jax.jit(_ref_forward)(inputs1, inputs2, params))
    # Precision decision (explicit): MXU dot inputs are bf16 (single pass) while
    # the reference uses precision="highest" f32; tolerance is sized for bf16
    # rounding accumulated over ~108 effective taps through two conv layers.
    err = float(jnp.max(jnp.abs(out - ref)))
    assert jnp.allclose(out, ref, atol=2e-2, rtol=2e-2), err

    print("KERNEL_OK")
</pallas_src>

<mosaic_0001>
module attributes {stable_mosaic.version = 11 : i64} {
  func.func @_unet_up2_ct_kernel(%arg0: i32, %arg1: memref<32x128xf32, #tpu.memory_space<vmem>>, %arg2: memref<16x32xf32, #tpu.memory_space<vmem>>, %arg3: memref<3x32x16xbf16, #tpu.memory_space<vmem>>, %arg4: memref<32x1xf32, #tpu.memory_space<vmem>>, %arg5: memref<32x1xf32, #tpu.memory_space<vmem>>, %arg6: memref<480x128xbf16, #tpu.memory_space<vmem>>, %arg7: memref<384x128xbf16, #tpu.memory_space<vmem>>, %arg8: memref<1x128xf32, #tpu.memory_space<vmem>>, %arg9: memref<1x128xf32, #tpu.memory_space<vmem>>, %arg10: memref<32x128xf32, #tpu.memory_space<vmem>>) attributes {dimension_semantics = [#tpu.dimension_semantics<parallel>], iteration_bounds = array<i64: 1>, scalar_prefetch = 0 : i64, scratch_operands = 0 : i64, tpu.core_type = #tpu.core_type<tc>, window_params = [{transform_indices = @transform_0, window_bounds = array<i64: 32, 128>}, {transform_indices = @transform_1, window_bounds = array<i64: 16, 32>}, {pipeline_mode = #tpu.pipeline_mode<synchronous>, transform_indices = @transform_2, window_bounds = array<i64: 3, 32, 16>}, {pipeline_mode = #tpu.pipeline_mode<synchronous>, transform_indices = @transform_3, window_bounds = array<i64: 32, 1>}, {pipeline_mode = #tpu.pipeline_mode<synchronous>, transform_indices = @transform_4, window_bounds = array<i64: 32, 1>}, {pipeline_mode = #tpu.pipeline_mode<synchronous>, transform_indices = @transform_5, window_bounds = array<i64: 480, 128>}, {pipeline_mode = #tpu.pipeline_mode<synchronous>, transform_indices = @transform_6, window_bounds = array<i64: 384, 128>}, {pipeline_mode = #tpu.pipeline_mode<synchronous>, transform_indices = @transform_7, window_bounds = array<i64: 1, 128>}, {pipeline_mode = #tpu.pipeline_mode<synchronous>, transform_indices = @transform_8, window_bounds = array<i64: 1, 128>}, {transform_indices = @transform_9, window_bounds = array<i64: 32, 128>}]} {
    %c0 = arith.constant 0 : index
    %c0_0 = arith.constant 0 : index
    %0 = vector.load %arg4[%c0, %c0_0] : memref<32x1xf32, #tpu.memory_space<vmem>>, vector<32x1xf32>
    %c0_1 = arith.constant 0 : index
    %c0_2 = arith.constant 0 : index
    %1 = vector.load %arg5[%c0_1, %c0_2] : memref<32x1xf32, #tpu.memory_space<vmem>>, vector<32x1xf32>
    %c0_3 = arith.constant 0 : index
    %c0_4 = arith.constant 0 : index
    %2 = vector.load %arg1[%c0_3, %c0_4] : memref<32x128xf32, #tpu.memory_space<vmem>>, vector<32x128xf32>
    %c0_5 = arith.constant 0 : index
    %c0_6 = arith.constant 0 : index
    %3 = vector.load %arg2[%c0_5, %c0_6] : memref<16x32xf32, #tpu.memory_space<vmem>>, vector<16x32xf32>
    %4 = arith.truncf %3 : vector<16x32xf32> to vector<16x32xbf16>
    %c0_7 = arith.constant 0 : index
    %c0_8 = arith.constant 0 : index
    %c0_9 = arith.constant 0 : index
    %5 = vector.load %arg3[%c0_7, %c0_8, %c0_9] : memref<3x32x16xbf16, #tpu.memory_space<vmem>>, vector<1x32x16xbf16>
    %6 = vector.shape_cast %5 : vector<1x32x16xbf16> to vector<32x16xbf16>
    %cst = arith.constant dense<0.000000e+00> : vector<32x32xf32>
    %7 = tpu.matmul %6, %4, %cst {dimension_numbers = #tpu.dot_dimension_numbers<[1], [0], [0], [1], [0, 0, 1, 1], [], []>} : vector<32x16xbf16>, vector<16x32xbf16>, vector<32x32xf32> -> vector<32x32xf32>
    %c1 = arith.constant 1 : index
    %c0_10 = arith.constant 0 : index
    %c0_11 = arith.constant 0 : index
    %8 = vector.load %arg3[%c1, %c0_10, %c0_11] : memref<3x32x16xbf16, #tpu.memory_space<vmem>>, vector<1x32x16xbf16>
    %9 = vector.shape_cast %8 : vector<1x32x16xbf16> to vector<32x16xbf16>
    %cst_12 = arith.constant dense<0.000000e+00> : vector<32x32xf32>
    %10 = tpu.matmul %9, %4, %cst_12 {dimension_numbers = #tpu.dot_dimension_numbers<[1], [0], [0], [1], [0, 0, 1, 1], [], []>} : vector<32x16xbf16>, vector<16x32xbf16>, vector<32x32xf32> -> vector<32x32xf32>
    %c2 = arith.constant 2 : index
    %c0_13 = arith.constant 0 : index
    %c0_14 = arith.constant 0 : index
    %11 = vector.load %arg3[%c2, %c0_13, %c0_14] : memref<3x32x16xbf16, #tpu.memory_space<vmem>>, vector<1x32x16xbf16>
    %12 = vector.shape_cast %11 : vector<1x32x16xbf16> to vector<32x16xbf16>
    %cst_15 = arith.constant dense<0.000000e+00> : vector<32x32xf32>
    %13 = tpu.matmul %12, %4, %cst_15 {dimension_numbers = #tpu.dot_dimension_numbers<[1], [0], [0], [1], [0, 0, 1, 1], [], []>} : vector<32x16xbf16>, vector<16x32xbf16>, vector<32x32xf32> -> vector<32x32xf32>
    %c1_i32 = arith.constant 1 : i32
    %14 = tpu.dynamic_rotate %2 by %c1_i32 dim 0 : vector<32x128xf32>, i32 -> vector<32x128xf32>
    %15 = vector.broadcast %0 : vector<32x1xf32> to vector<32x128xf32>
    %16 = arith.mulf %14, %15 : vector<32x128xf32>
    %c31_i32 = arith.constant 31 : i32
    %17 = tpu.dynamic_rotate %2 by %c31_i32 dim 0 : vector<32x128xf32>, i32 -> vector<32x128xf32>
    %18 = vector.broadcast %1 : vector<32x1xf32> to vector<32x128xf32>
    %19 = arith.mulf %17, %18 : vector<32x128xf32>
    %20 = tpu.concatenate %16, %2, %19, %7, %10, %13 in 1 : vector<32x128xf32>, vector<32x128xf32>, vector<32x128xf32>, vector<32x32xf32>, vector<32x32xf32>, vector<32x32xf32> -> vector<32x480xf32>
    %21 = arith.truncf %20 : vector<32x480xf32> to vector<32x480xbf16>
    %c0_16 = arith.constant 0 : index
    %c0_17 = arith.constant 0 : index
    %22 = vector.load %arg6[%c0_16, %c0_17] : memref<480x128xbf16, #tpu.memory_space<vmem>>, vector<480x128xbf16>
    %cst_18 = arith.constant dense<0.000000e+00> : vector<32x128xf32>
    %23 = tpu.matmul %21, %22, %cst_18 {dimension_numbers = #tpu.dot_dimension_numbers<[1], [0], [0], [1], [0, 0, 1, 1], [], []>} : vector<32x480xbf16>, vector<480x128xbf16>, vector<32x128xf32> -> vector<32x128xf32>
    %c0_19 = arith.constant 0 : index
    %c0_20 = arith.constant 0 : index
    %24 = vector.load %arg8[%c0_19, %c0_20] : memref<1x128xf32, #tpu.memory_space<vmem>>, vector<1x128xf32>
    %25 = vector.broadcast %24 : vector<1x128xf32> to vector<32x128xf32>
    %26 = arith.addf %23, %25 : vector<32x128xf32>
    %cst_21 = arith.constant 0.000000e+00 : f32
    %27 = vector.broadcast %cst_21 : f32 to vector<32x128xf32>
    %28 = arith.maximumf %26, %27 : vector<32x128xf32>
    %c1_i32_22 = arith.constant 1 : i32
    %29 = tpu.dynamic_rotate %28 by %c1_i32_22 dim 0 : vector<32x128xf32>, i32 -> vector<32x128xf32>
    %30 = vector.broadcast %0 : vector<32x1xf32> to vector<32x128xf32>
    %31 = arith.mulf %29, %30 : vector<32x128xf32>
    %c31_i32_23 = arith.constant 31 : i32
    %32 = tpu.dynamic_rotate %28 by %c31_i32_23 dim 0 : vector<32x128xf32>, i32 -> vector<32x128xf32>
    %33 = vector.broadcast %1 : vector<32x1xf32> to vector<32x128xf32>
    %34 = arith.mulf %32, %33 : vector<32x128xf32>
    %35 = tpu.concatenate %31, %28, %34 in 1 : vector<32x128xf32>, vector<32x128xf32>, vector<32x128xf32> -> vector<32x384xf32>
    %36 = arith.truncf %35 : vector<32x384xf32> to vector<32x384xbf16>
    %c0_24 = arith.constant 0 : index
    %c0_25 = arith.constant 0 : index
    %37 = vector.load %arg7[%c0_24, %c0_25] : memref<384x128xbf16, #tpu.memory_space<vmem>>, vector<384x128xbf16>
    %cst_26 = arith.constant dense<0.000000e+00> : vector<32x128xf32>
    %38 = tpu.matmul %36, %37, %cst_26 {dimension_numbers = #tpu.dot_dimension_numbers<[1], [0], [0], [1], [0, 0, 1, 1], [], []>} : vector<32x384xbf16>, vector<384x128xbf16>, vector<32x128xf32> -> vector<32x128xf32>
    %c0_27 = arith.constant 0 : index
    %c0_28 = arith.constant 0 : index
    %39 = vector.load %arg9[%c0_27, %c0_28] : memref<1x128xf32, #tpu.memory_space<vmem>>, vector<1x128xf32>
    %40 = vector.broadcast %39 : vector<1x128xf32> to vector<32x128xf32>
    %41 = arith.addf %38, %40 : vector<32x128xf32>
    %cst_29 = arith.constant 0.000000e+00 : f32
    %42 = vector.broadcast %cst_29 : f32 to vector<32x128xf32>
    %43 = arith.maximumf %41, %42 : vector<32x128xf32>
    %c0_30 = arith.constant 0 : index
    %c0_31 = arith.constant 0 : index
    %44 = vector.load %arg10[%c0_30, %c0_31] : memref<32x128xf32, #tpu.memory_space<vmem>>, vector<32x128xf32>
    tpu.vector_store %arg10[%c0_30, %c0_31], %43 {strides = array<i32>} : memref<32x128xf32, #tpu.memory_space<vmem>>, vector<32x128xf32>,
    return
  }
  func.func @transform_0(%arg0: i32) -> (i32, i32) {
    %c0_i32 = arith.constant 0 : i32
    %c0_i32_0 = arith.constant 0 : i32
    return %arg0, %c0_i32 : i32, i32
  }
  func.func @transform_1(%arg0: i32) -> (i32, i32) {
    %c0_i32 = arith.constant 0 : i32
    %c0_i32_0 = arith.constant 0 : i32
    return %arg0, %c0_i32 : i32, i32
  }
  func.func @transform_2(%arg0: i32) -> (i32, i32, i32) {
    %c0_i32 = arith.constant 0 : i32
    %c0_i32_0 = arith.constant 0 : i32
    %c0_i32_1 = arith.constant 0 : i32
    %c0_i32_2 = arith.constant 0 : i32
    return %c0_i32, %c0_i32_0, %c0_i32_1 : i32, i32, i32
  }
  func.func @transform_3(%arg0: i32) -> (i32, i32) {
    %c0_i32 = arith.constant 0 : i32
    %c0_i32_0 = arith.constant 0 : i32
    %c0_i32_1 = arith.constant 0 : i32
    return %c0_i32, %c0_i32_0 : i32, i32
  }
  func.func @transform_4(%arg0: i32) -> (i32, i32) {
    %c0_i32 = arith.constant 0 : i32
    %c0_i32_0 = arith.constant 0 : i32
    %c0_i32_1 = arith.constant 0 : i32
    return %c0_i32, %c0_i32_0 : i32, i32
  }
  func.func @transform_5(%arg0: i32) -> (i32, i32) {
    %c0_i32 = arith.constant 0 : i32
    %c0_i32_0 = arith.constant 0 : i32
    %c0_i32_1 = arith.constant 0 : i32
    return %c0_i32, %c0_i32_0 : i32, i32
  }
  func.func @transform_6(%arg0: i32) -> (i32, i32) {
    %c0_i32 = arith.constant 0 : i32
    %c0_i32_0 = arith.constant 0 : i32
    %c0_i32_1 = arith.constant 0 : i32
    return %c0_i32, %c0_i32_0 : i32, i32
  }
  func.func @transform_7(%arg0: i32) -> (i32, i32) {
    %c0_i32 = arith.constant 0 : i32
    %c0_i32_0 = arith.constant 0 : i32
    %c0_i32_1 = arith.constant 0 : i32
    return %c0_i32, %c0_i32_0 : i32, i32
  }
  func.func @transform_8(%arg0: i32) -> (i32, i32) {
    %c0_i32 = arith.constant 0 : i32
    %c0_i32_0 = arith.constant 0 : i32
    %c0_i32_1 = arith.constant 0 : i32
    return %c0_i32, %c0_i32_0 : i32, i32
  }
  func.func @transform_9(%arg0: i32) -> (i32, i32) {
    %c0_i32 = arith.constant 0 : i32
    %c0_i32_0 = arith.constant 0 : i32
    return %arg0, %c0_i32 : i32, i32
  }
}

</mosaic_0001>

<bundles_post_ra>
// kernel: tile.13
= control target key start
LH: loop header
LB: loop body
LE: loop exit
PB: predicated region body
PF: predicated region fallthrough
CT: control target
= control target key end

     0   :  { %s28_s0 = inlined_call_operand.vmem [shape: f32[8], index: 0, kind: input, shape index: {}]   ;;  %s29_s1 = inlined_call_operand.vmem [shape: f32[16,8], index: 1, kind: output, shape index: {}]  }
   0x1   :  { %v4_v0 = vld [vmem:[%s28_s0] ss:$0 sm:$0xff] }
   0x2   :  { %5 = vst [vmem:[%s29_s1] sm:$0xff] %v4_v0  ;;  %8 = vst [vmem:[%s29_s1 + $0x8] sm:$0xff] %v4_v0 }

// kernel: tile.14
= control target key start
LH: loop header
LB: loop body
LE: loop exit
PB: predicated region body
PF: predicated region fallthrough
CT: control target
= control target key end

     0   :  { %s133_s10 = smov 120   ;;  %s134_s11 = smov 104   ;;  %vm3_vm0 = vcmask 64512   ;;  %vm9_vm1 = vcmask 1048512   ;;  %vm15_vm2 = vcmask 982912   ;;  %vm21_vm3 = vcmask 917312   ;;  %s209_s0 = inlined_call_operand.vmem [shape: f32[16,8], index: 0, kind: input, shape index: {}]   ;;  %s210_s1 = inlined_call_operand.vmem [shape: f32[1,128], index: 1, kind: output, shape index: {}]  }
   0x1   :  { %v103_v0 = vld [vmem:[%s209_s0 + $0xf] sm:$0x1]   ;;  %v105_v1 = vld [vmem:[%s209_s0 + $0xd] sm:$0x1]   ;;  %v104_v2 = vld [vmem:[%s209_s0 + $0xe] sm:$0x1]  }
   0x2   :  { %7 = vrot.lane.b32.xlu0 %v103_v0, %s133_s10  ;;  %19 = vrot.lane.b32.xlu1 %v105_v1, %s134_s11  ;;  %v106_v3 = vld [vmem:[%s209_s0 + $0xc] sm:$0x1]   ;;  %s135_s16 = smov 112   ;;  %s136_s17 = smov 96   ;;  %v107_v4 = vld [vmem:[%s209_s0 + $0xb] sm:$0x1]  }
   0x3   :  { %v108_v5 = vld [vmem:[%s209_s0 + $0xa] sm:$0x1]   ;;  %v2_v6 = vld [vmem:[%s209_s0] sm:$0x1]   ;;  %s137_s24 = smov 88   ;;  %s138_s25 = smov 80  }
   0x4   :  { %4 = vst.msk [vmem:[#allocation0] sm:$0x1] %vm3_vm0, %v2_v6   ;;  %v109_v7 = vld [vmem:[%s209_s0 + $0x9] sm:$0x1]   ;;  %v110_v8 = vld [vmem:[%s209_s0 + $0x8] sm:$0x1]  }
   0x5   :  { %s139_s30 = smov 72   ;;  %s140_s2 = smov 64   ;;  %v111_v9 = vld [vmem:[%s209_s0 + $0x7] sm:$0x1]   ;;  %v112_v10 = vld [vmem:[%s209_s0 + $0x6] sm:$0x1]  }
   0x6   :  { %13 = vrot.lane.b32.xlu0 %v104_v2, %s135_s16  ;;  %25 = vrot.lane.b32.xlu1 %v106_v3, %s136_s17  ;;  %s141_s7 = smov 56   ;;  %s142_s8 = smov 48   ;;  %v113_v11 = vld [vmem:[%s209_s0 + $0x5] sm:$0x1]   ;;  %v114_v12 = vld [vmem:[%s209_s0 + $0x4] sm:$0x1]  }
   0x7   :  { %s143_s13 = smov 40   ;;  %s144_s14 = smov 32   ;;  %v115_v13 = vld [vmem:[%s209_s0 + $0x3] sm:$0x1]   ;;  %v116_v14 = vld [vmem:[%s209_s0 + $0x2] sm:$0x1]  }
   0x8   :  { %s145_s19 = smov 24   ;;  %s146_s20 = smov 16   ;;  %v117_v15 = vld [vmem:[%s209_s0 + $0x1] sm:$0x1]   ;;  %vm27_vm4 = vcmask 851712   ;;  %vm33_vm5 = vcmask 786112  }
   0x9   :  { %s147_s0 = smov 8   ;;  %vm39_vm6 = vcmask 720512   ;;  %vm45_vm7 = vcmask 654912   ;;  %vm51_vm8 = vcmask 589312   ;;  %vm57_vm9 = vcmask 523712  }
   0xa   :  { %31 = vrot.lane.b32.xlu0 %v107_v4, %s137_s24  ;;  %37 = vrot.lane.b32.xlu1 %v108_v5, %s138_s25  ;;  %vm63_vm10 = vcmask 458112   ;;  %vm69_vm11 = vcmask 392512   ;;  %vm75_vm12 = vcmask 326912   ;;  %vm81_vm13 = vcmask 261312  }
   0xb   :  { %vm87_vm14 = vcmask 195712   ;;  %vm93_vm15 = vcmask 130112  }
   0xe   :  { %43 = vrot.lane.b32.xlu0 %v109_v7, %s139_s30  ;;  %49 = vrot.lane.b32.xlu1 %v110_v8, %s140_s2 }
  0x12   :  { %55 = vrot.lane.b32.xlu0 %v111_v9, %s141_s7  ;;  %61 = vrot.lane.b32.xlu1 %v112_v10, %s142_s8 }
  0x16   :  { %67 = vrot.lane.b32.xlu0 %v113_v11, %s143_s13  ;;  %73 = vrot.lane.b32.xlu1 %v114_v12, %s144_s14 }
  0x1a   :  { %79 = vrot.lane.b32.xlu0 %v115_v13, %s145_s19  ;;  %85 = vrot.lane.b32.xlu1 %v116_v14, %s146_s20 }
  0x1e   :  { %91 = vrot.lane.b32.xlu0 %v117_v15, %s147_s0 }
  0x74   :  { %v8_v16 = vpop.permute.xlu0 %7   ;;  %v20_v17 = vpop.permute.xlu1 %19  }
  0x75   :  { %10 = vst.msk [vmem:[#allocation0] sm:$0x1] %vm9_vm1, %v8_v16  }
  0x78   :  { %v14_v18 = vpop.permute.xlu0 %13   ;;  %v26_v19 = vpop.permute.xlu1 %25  }
  0x79   :  { %16 = vst.msk [vmem:[#allocation0] sm:$0x1] %vm15_vm2, %v14_v18  }
  0x7a   :  { %22 = vst.msk [vmem:[#allocation0] sm:$0x1] %vm21_vm3, %v20_v17  }
  0x7b   :  { %28 = vst.msk [vmem:[#allocation0] sm:$0x1] %vm27_vm4, %v26_v19  }
  0x7c   :  { %v32_v20 = vpop.permute.xlu0 %31   ;;  %v38_v21 = vpop.permute.xlu1 %37  }
  0x7d   :  { %34 = vst.msk [vmem:[#allocation0] sm:$0x1] %vm33_vm5, %v32_v20  }
  0x7e   :  { %40 = vst.msk [vmem:[#allocation0] sm:$0x1] %vm39_vm6, %v38_v21  }
  0x80   :  { %v44_v22 = vpop.permute.xlu0 %43   ;;  %v50_v23 = vpop.permute.xlu1 %49  }
  0x81   :  { %46 = vst.msk [vmem:[#allocation0] sm:$0x1] %vm45_vm7, %v44_v22  }
  0x82   :  { %52 = vst.msk [vmem:[#allocation0] sm:$0x1] %vm51_vm8, %v50_v23  }
  0x84   :  { %v56_v24 = vpop.permute.xlu0 %55   ;;  %v62_v25 = vpop.permute.xlu1 %61  }
  0x85   :  { %58 = vst.msk [vmem:[#allocation0] sm:$0x1] %vm57_vm9, %v56_v24  }
  0x86   :  { %64 = vst.msk [vmem:[#allocation0] sm:$0x1] %vm63_vm10, %v62_v25  }
  0x88   :  { %v68_v26 = vpop.permute.xlu0 %67   ;;  %v74_v27 = vpop.permute.xlu1 %73  }
  0x89   :  { %70 = vst.msk [vmem:[#allocation0] sm:$0x1] %vm69_vm11, %v68_v26  }
  0x8a   :  { %76 = vst.msk [vmem:[#allocation0] sm:$0x1] %vm75_vm12, %v74_v27  }
  0x8c   :  { %v80_v28 = vpop.permute.xlu0 %79   ;;  %v86_v29 = vpop.permute.xlu1 %85  }
  0x8d   :  { %82 = vst.msk [vmem:[#allocation0] sm:$0x1] %vm81_vm13, %v80_v28  }
  0x8e   :  { %88 = vst.msk [vmem:[#allocation0] sm:$0x1] %vm87_vm14, %v86_v29  }
  0x90   :  { %v92_v30 = vpop.permute.xlu0 %91  }
  0x91   :  { %94 = vst.msk [vmem:[#allocation0] sm:$0x1] %vm93_vm15, %v92_v30  }
  0x98   :  { %v99_v31 = vld [vmem:[#allocation0] sm:$0x1] }
  0x99   :  { %102 = vst [vmem:[%s210_s1] sm:$0x1] %v99_v31 }

// kernel: unet_up2_ct_forward.1
= control target key start
LH: loop header
LB: loop body
LE: loop exit
PB: predicated region body
PF: predicated region fallthrough
CT: control target
= control target key end

     0   :  { %v1347_v2 = vmov 0   ;;  %vm62_vm0 = vcmask 130048   ;;  %v262_v31 = vlaneseq  ;;  %s1348_s10 = smov 64   ;;  %s1349_s13 = smov 32   ;;  %vm358_vm3 = vcmask 261120   ;;  %s1772_s1 = inlined_call_operand.vmem [shape: f32[16,32], index: 1, kind: input, shape index: {}]   ;;  %s1773_s2 = inlined_call_operand.vmem [shape: bf16[3,32,16], index: 2, kind: input, shape index: {}]   ;;  %s1774_s3 = inlined_call_operand.vmem [shape: f32[32,1], index: 3, kind: input, shape index: {}]   ;;  %s1775_s4 = inlined_call_operand.vmem [shape: f32[32,1], index: 4, kind: input, shape index: {}]   ;;  %s1776_s5 = inlined_call_operand.vmem [shape: bf16[480,128], index: 5, kind: input, shape index: {}]   ;;  %s1777_s0 = inlined_call_operand.vmem [shape: f32[32,128], index: 0, kind: input, shape index: {}]   ;;  %s1778_s6 = inlined_call_operand.vmem [shape: bf16[384,128], index: 6, kind: input, shape index: {}]   ;;  %s1779_s7 = inlined_call_operand.vmem [shape: f32[1,128], index: 7, kind: input, shape index: {}]   ;;  %s1780_s8 = inlined_call_operand.vmem [shape: f32[1,128], index: 8, kind: input, shape index: {}]   ;;  %s1781_s9 = inlined_call_operand.vmem [shape: f32[32,128], index: 9, kind: output, shape index: {}]  }
   0x1   :  { %v45_v0 = vld [vmem:[%s1772_s1] sm:$0xff]  ;;  %v46_v1 = vld [vmem:[%s1772_s1 + $0x8] sm:$0xff]  ;;  %1265 = vset.pattern.permute.xlu0 %v1347_v2  ;;  %1266 = vset.pattern.permute.xlu1 %v1347_v2  ;;  %v1291_v8 = vld [vmem:[%s1773_s2 + $0x10] sm:$0xff]   ;;  %vm363_vm4 = vcmask 523264   ;;  %vm623_vm5 = vcmask 785408  }
   0x2   :  { %v47_v3 = vpack.c.bf16 %v46_v1, %v45_v0  ;;  %v1287_v4 = vld [vmem:[%s1773_s2] sm:$0xff]   ;;  %v1289_v6 = vld [vmem:[%s1773_s2 + $0x8] sm:$0xff]   ;;  %v1292_v13 = vld [vmem:[%s1773_s2 + $0x18] sm:$0xff]   ;;  %v1513_v36 = vshrl.u32 %v262_v31, 7 }
   0x3   :  { %v1288_v5 = vld [vmem:[%s1773_s2 + $0x20] sm:$0xff]   ;;  %v1290_v7 = vld [vmem:[%s1773_s2 + $0x28] sm:$0xff]   ;;  %1226 = vmatprep.mubr.msk.bf16.mxu1 %vm62_vm0, %v1287_v4  ;;  %v36_v14 = vld [vmem:[%s1774_s3 + $0x18] sm:$0xff] }
   0x4   :  { %1224 = vmatprep.subr.bf16.mxu1 %v47_v3  ;;  %1236 = vmatprep.subr.bf16.mxu0 %v47_v3  ;;  %v33_v9 = vld [vmem:[%s1774_s3] sm:$0xff]  ;;  %v34_v11 = vld [vmem:[%s1774_s3 + $0x8] sm:$0xff]  ;;  %v35_v15 = vld [vmem:[%s1774_s3 + $0x10] sm:$0xff]  ;;  %vm297_vm1 = vcmp.lt.s32.totalorder %v1513_v36, 7  ;;  %vm264_vm2 = vcmp.lt.s32.totalorder %v1513_v36, 1 }
   0x5   :  { %1225 = vmatpush3.bf16.msra.mxu1 %v47_v3  ;;  %1237 = vmatpush3.bf16.msra.mxu0 %v47_v3  ;;  %v37_v10 = vld [vmem:[%s1775_s4] sm:$0xff]  ;;  %v38_v12 = vld [vmem:[%s1775_s4 + $0x8] sm:$0xff]  ;;  %v1293_v16 = vld [vmem:[%s1776_s5 + $0xb8] sm:$0xff]  }
   0x6   :  { %1238 = vmatprep.mubr.msk.bf16.mxu0 %vm62_vm0, %v1288_v5  ;;  %1230 = vmatprep.subr.bf16.mxu1 %v47_v3  ;;  %v1294_v17 = vld [vmem:[%s1776_s5 + $0x78] sm:$0xff]   ;;  %v1295_v18 = vld [vmem:[%s1776_s5 + $0xb0] sm:$0xff]   ;;  %v1298_v21 = vld [vmem:[%s1776_s5 + $0xa8] sm:$0xff]  }
   0x7   :  { %679 = vmatprep.subr.bf16.mxu0 %v1347_v2  ;;  %271 = vperm.xlu0 %1265, %v33_v9   ;;  %v1296_v19 = vld [vmem:[%s1776_s5 + $0x38] sm:$0xff]   ;;  %v1297_v20 = vld [vmem:[%s1776_s5 + $0x70] sm:$0xff]   ;;  %v1300_v23 = vld [vmem:[%s1776_s5 + $0x68] sm:$0xff]  }
   0x8   :  { %1227 = vmatmul.mubr.msk.bf16.vlgmr.msra.gmra.mxu1 %vm62_vm0, %v1289_v6  ;;  %1239 = vmatmul.mubr.msk.bf16.vlgmr.msra.gmra.mxu0 %vm62_vm0, %v1290_v7  ;;  %v1299_v22 = vld [vmem:[%s1776_s5 + $0x30] sm:$0xff]   ;;  %v1301_v24 = vld [vmem:[%s1776_s5 + $0xa0] sm:$0xff]   ;;  %v1302_v25 = vld [vmem:[%s1776_s5 + $0x28] sm:$0xff]  }
   0x9   :  { %1231 = vmatpush3.bf16.msra.mxu1 %v47_v3  ;;  %1232 = vmatprep.mubr.msk.bf16.mxu1 %vm62_vm0, %v1291_v8  ;;  %v1303_v26 = vld [vmem:[%s1776_s5 + $0x60] sm:$0xff]   ;;  %v1304_v27 = vld [vmem:[%s1776_s5 + $0x98] sm:$0xff]   ;;  %v1307_v30 = vld [vmem:[%s1776_s5 + $0x90] sm:$0xff]  }
   0xa   :  { %304 = vperm.xlu1 %1266, %v37_v10   ;;  %680 = vmatpush1.bf16.msra.mxu0 %v1293_v16  ;;  %v1305_v28 = vld [vmem:[%s1776_s5 + $0x20] sm:$0xff]   ;;  %v1306_v29 = vld [vmem:[%s1776_s5 + $0x58] sm:$0xff]   ;;  %v1309_v33 = vld [vmem:[%s1776_s5 + $0x50] sm:$0xff]  }
   0xb   :  { %276 = vperm.xlu0 %1265, %v34_v11   ;;  %681 = vmatprep.subr.bf16.mxu0 %v1347_v2  ;;  %v1308_v32 = vld [vmem:[%s1776_s5 + $0x18] sm:$0xff]   ;;  %v1310_v34 = vld [vmem:[%s1776_s5 + $0x88] sm:$0xff]   ;;  %v1311_v35 = vld [vmem:[%s1776_s5 + $0x10] sm:$0xff]  }
   0xc   :  { %1158 = vmatprep.subr.bf16.mxu1 %v1294_v17  ;;  %v1518_v37 = vld [vmem:[%s1777_s0] sm:$0xff]  ;;  %v1312_v38 = vld [vmem:[%s1776_s5 + $0x48] sm:$0xff]   ;;  %v1546_v47 = vld [vmem:[%s1777_s0 + $0x18] sm:$0xff] }
   0xd   :  { %v42_v39 = vld [vmem:[%s1777_s0 + $0x8] sm:$0xff]  ;;  %v293_v40 = vrot.slane %v1518_v37, 1  ;;  %v1313_v45 = vld [vmem:[%s1776_s5 + $0x80] sm:$0xff]   ;;  %v258_v50 = vrot.slane %v1518_v37, 7  ;;  %v261_v51 = vrot.slane %v1546_v47, 7  ;;  %v1562_v52 = vld [vmem:[%s1777_s0 + $0x10] sm:$0xff] }
   0xe   :  { %309 = vperm.xlu1 %1266, %v38_v12   ;;  %682 = vmatpush1.bf16.msra.mxu0 %v1295_v18  ;;  %v294_v41 = vrot.slane %v42_v39, 1  ;;  %v369_v42 = vpack.c.bf16 %v42_v39, %v1518_v37  ;;  %v1314_v43 = vld [vmem:[%s1776_s5 + $0x8] sm:$0xff]   ;;  %v1315_v46 = vld [vmem:[%s1776_s5 + $0x40] sm:$0xff]   ;;  %v259_v53 = vrot.slane %v42_v39, 7  ;;  %v295_v54 = vrot.slane %v1562_v52, 1  ;;  %v1319_v63 = vld [vmem:[%s1776_s5 + $0xd8] sm:$0xff]  }
   0xf   :  { %281 = vperm.xlu0 %1265, %v35_v15   ;;  %683 = vmatprep.subr.bf16.mxu0 %v1347_v2  ;;  %v1317_v48 = vld [vmem:[%s1776_s5] sm:$0xff]   ;;  %v1316_v49 = vld [vmem:[%s1776_s5 + $0xe8] sm:$0xff]   ;;  %v268_v57 = vsel %vm264_vm2, %v261_v51, %v258_v50  ;;  %v260_v7 = vrot.slane %v1562_v52, 7  ;;  %v373_v15 = vpack.c.bf16 %v1546_v47, %v1562_v52  ;;  %v1320_v16 = vld [vmem:[%s1776_s5 + $0xd0] sm:$0xff]  }
  0x10   :  { %1233 = vmatmul.mubr.msk.bf16.vlgmr.msra.gmra.mxu1 %vm62_vm0, %v1292_v13  ;;  %v300_v44 = vsel %vm297_vm1, %v293_v40, %v294_v41  ;;  %v1318_v55 = vld [vmem:[%s1776_s5 + $0xe0] sm:$0xff]   ;;  %v267_v59 = vsel %vm264_vm2, %v258_v50, %v259_v53  ;;  %v299_v60 = vsel %vm297_vm1, %v294_v41, %v295_v54 }
  0x11   :  { %1159 = vmatpush3.bf16.msra.mxu1 %v1296_v19  ;;  %662 = vmatprep.mubr.bf16.mxu1 %v369_v42  ;;  %v265_v9 = vsel %vm264_vm2, %v260_v7, %v261_v51  ;;  %v266_v11 = vsel %vm264_vm2, %v259_v53, %v260_v7 }
  0x12   :  { %286 = vperm.xlu1 %1266, %v36_v14   ;;  %1160 = vmatprep.subr.bf16.mxu1 %v1297_v20 }
  0x13   :  { %684 = vmatpush1.bf16.msra.mxu0 %v1298_v21  ;;  %v1321_v21 = vld [vmem:[%s1776_s5 + $0xc8] sm:$0xff]  }
  0x14   :  { %685 = vmatprep.subr.bf16.mxu0 %v1347_v2 }
  0x15   :  { %1161 = vmatpush3.bf16.msra.mxu1 %v1299_v22 }
  0x16   :  { %1162 = vmatprep.subr.bf16.mxu1 %v1300_v23 }
  0x17   :  { %686 = vmatpush1.bf16.msra.mxu0 %v1301_v24 }
  0x18   :  { %687 = vmatprep.subr.bf16.mxu0 %v1347_v2 }
  0x19   :  { %1163 = vmatpush3.bf16.msra.mxu1 %v1302_v25 }
  0x1a   :  { %1164 = vmatprep.subr.bf16.mxu1 %v1303_v26  ;;  %v1322_v26 = vld [vmem:[%s1776_s5 + $0xc0] sm:$0xff]  }
  0x1b   :  { %688 = vmatpush1.bf16.msra.mxu0 %v1304_v27 }
  0x1c   :  { %689 = vmatprep.subr.bf16.mxu0 %v1347_v2 }
  0x1d   :  { %1165 = vmatpush3.bf16.msra.mxu1 %v1305_v28 }
  0x1e   :  { %1166 = vmatprep.subr.bf16.mxu1 %v1306_v29 }
  0x1f   :  { %690 = vmatpush1.bf16.msra.mxu0 %v1307_v30  ;;  %v40_v30 = vld [vmem:[%s1775_s4 + $0x18] sm:$0xff] }
  0x20   :  { %691 = vmatprep.subr.bf16.mxu0 %v1347_v2 }
  0x21   :  { %1167 = vmatpush3.bf16.msra.mxu1 %v1308_v32 }
  0x22   :  { %1168 = vmatprep.subr.bf16.mxu1 %v1309_v33 }
  0x23   :  { %692 = vmatpush1.bf16.msra.mxu0 %v1310_v34  ;;  %v39_v34 = vld [vmem:[%s1775_s4 + $0x10] sm:$0xff] }
  0x24   :  { %693 = vmatprep.subr.bf16.mxu0 %v1347_v2 }
  0x25   :  { %1169 = vmatpush3.bf16.msra.mxu1 %v1311_v35 }
  0x26   :  { %1170 = vmatprep.subr.bf16.mxu1 %v1312_v38 }
  0x27   :  { %694 = vmatpush1.bf16.msra.mxu0 %v1313_v45 }
  0x28   :  { %699 = vmatprep.subr.bf16.mxu0 %v1347_v2 }
  0x29   :  { %1171 = vmatpush3.bf16.msra.mxu1 %v1314_v43 }
  0x2a   :  { %1172 = vmatprep.subr.bf16.mxu1 %v1315_v46 }
  0x2b   :  { %700 = vmatpush2.bf16.msra.mxu0 %v1316_v49 }
  0x2c   :  { %701 = vmatprep.subr.bf16.mxu0 %v1347_v2 }
  0x2d   :  { %1173 = vmatpush3.bf16.msra.mxu1 %v1317_v48 }
  0x2f   :  { %702 = vmatpush2.bf16.msra.mxu0 %v1318_v55  ;;  %v296_v55 = vrot.slane %v1546_v47, 1 }
  0x30   :  { %703 = vmatprep.subr.bf16.mxu0 %v1347_v2 }
  0x33   :  { %704 = vmatpush2.bf16.msra.mxu0 %v1319_v63 }
  0x34   :  { %705 = vmatprep.subr.bf16.mxu0 %v1347_v2 }
  0x37   :  { %706 = vmatpush2.bf16.msra.mxu0 %v1320_v16  ;;  %v1329_v16 = vld [vmem:[%s1778_s6 + $0x68] sm:$0xff]  }
  0x38   :  { %707 = vmatprep.subr.bf16.mxu0 %v1347_v2 }
  0x3b   :  { %708 = vmatpush2.bf16.msra.mxu0 %v1321_v21  ;;  %v1334_v21 = vld [vmem:[%s1778_s6 + $0x20] sm:$0xff]  }
  0x3c   :  { %709 = vmatprep.subr.bf16.mxu0 %v1347_v2 }
  0x3f   :  { %710 = vmatpush2.bf16.msra.mxu0 %v1322_v26  ;;  %v1339_v26 = vld [vmem:[%s1778_s6 + $0x90] sm:$0xff]  }
  0x82   :  { %v1568_v56 = vpop.permute.xlu0 %271 }
  0x83   :  { %v289_v61 = vmul.f32 %v1568_v56, %v268_v57 }
  0x85   :  { %v1572_v58 = vpop.permute.xlu1 %304 }
  0x86   :  { %v1583_v62 = vmul.f32 %v1572_v58, %v300_v44  ;;  %v1588_v0 = vpop.permute.xlu0 %276 }
  0x87   :  { %v290_v3 = vmul.f32 %v1588_v0, %v267_v59  ;;  %v298_v59 = vsel %vm297_vm1, %v295_v54, %v296_v55 }
  0x89   :  { %v1590_v1 = vpop.permute.xlu1 %309  ;;  %v368_v5 = vpack.c.bf16 %v290_v3, %v289_v61  ;;  %v301_v61 = vsel %vm297_vm1, %v296_v55, %v293_v40  ;;  %v1323_v40 = vld [vmem:[%s1778_s6 + $0x78] sm:$0xff]  }
  0x8a   :  { %v1595_v4 = vmul.f32 %v1590_v1, %v299_v60  ;;  %v1605_v10 = vpop.permute.xlu0 %281  ;;  %1186 = vmatprep.subr.bf16.mxu1 %v1323_v40 }
  0x8b   :  { %663 = vmatmul.mubr.bf16.vlgmr.msra.gmra.mxu1 %v368_v5  ;;  %v291_v13 = vmul.f32 %v1605_v10, %v266_v11  ;;  %v1324_v11 = vld [vmem:[%s1778_s6 + $0xb8] sm:$0xff]  }
  0x8c   :  { %v370_v6 = vpack.c.bf16 %v1595_v4, %v1583_v62  ;;  %670 = vmatprep.mubr.bf16.mxu1 %v373_v15  ;;  %1242 = vmatprep.subr.bf16.mxu0 %v1324_v11  ;;  %v1328_v15 = vld [vmem:[%s1778_s6 + $0x30] sm:$0xff]  }
  0x8d   :  { %v1601_v8 = vpop.permute.xlu1 %286 }
  0x8e   :  { %v292_v12 = vmul.f32 %v1601_v8, %v265_v9 }
  0x90   :  { %v372_v14 = vpack.c.bf16 %v292_v12, %v291_v13  ;;  %v1325_v12 = vld [vmem:[%s1778_s6 + $0x38] sm:$0xff]   ;;  %v1326_v13 = vld [vmem:[%s1778_s6 + $0x70] sm:$0xff]  }
  0x91   :  { %1187 = vmatpush3.bf16.msra.mxu1 %v1325_v12 }
  0x92   :  { %1188 = vmatprep.subr.bf16.mxu1 %v1326_v13 }
  0x93   :  { %671 = vmatmul.mubr.bf16.gmra.mxu1 %v372_v14  ;;  %v1327_v14 = vld [vmem:[%s1778_s6 + $0xb0] sm:$0xff]  }
  0x95   :  { %1189 = vmatpush3.bf16.msra.mxu1 %v1328_v15 }
  0x96   :  { %1190 = vmatprep.subr.bf16.mxu1 %v1329_v16 }
  0xc8   :  { %v1228_v17 = vpop.f32.mrf.mxu1  ;;  %v1240_v18 = vpop.f32.mrf.mxu0 }
  0xca   :  { %v103_v19 = vpop.f32.mrf.mxu1  ;;  %v243_v20 = vpop.f32.mrf.mxu0 }
  0xcc   :  { %v1229_v22 = vpop.f32.mrf.mxu1  ;;  %v1241_v23 = vpop.f32.mrf.mxu0 }
  0xcd   :  { %v1282_v2 = vpack.i.bf16 %v1241_v23, %v1240_v18  ;;  %v1331_v18 = vld [vmem:[%s1778_s6 + $0x28] sm:$0xff]   ;;  %v1336_v23 = vld [vmem:[%s1778_s6 + $0x98] sm:$0xff]  }
  0xce   :  { %v106_v24 = vpop.f32.mrf.mxu1  ;;  %v246_v25 = vpop.f32.mrf.mxu0  ;;  %1191 = vmatpush3.bf16.msra.mxu1 %v1331_v18 }
  0xcf   :  { %v1267_v27 = vpack.i.bf16 %v246_v25, %v243_v20  ;;  %v1333_v20 = vld [vmem:[%s1778_s6 + $0xa0] sm:$0xff]   ;;  %v1338_v25 = vld [vmem:[%s1778_s6 + $0x50] sm:$0xff]  }
  0xd0   :  { %v1234_v28 = vpop.f32.mrf.mxu1 }
  0xd1   :  { %1268 = vrot.lane.b32.xlu1 %v1267_v27, %s1348_s10  ;;  %v1340_v27 = vld [vmem:[%s1778_s6 + $0x10] sm:$0xff]  }
  0xd2   :  { %v173_v29 = vpop.f32.mrf.mxu1 }
  0xd4   :  { %v1235_v31 = vpop.f32.mrf.mxu1 }
  0xd5   :  { %319 = vperm.xlu1 %1266, %v40_v30   ;;  %v1277_v35 = vpack.i.bf16 %v1235_v31, %v1234_v28  ;;  %v1341_v28 = vld [vmem:[%s1778_s6 + $0x48] sm:$0xff]   ;;  %v1344_v31 = vld [vmem:[%s1778_s6 + $0x40] sm:$0xff]  }
  0xd6   :  { %v176_v32 = vpop.f32.mrf.mxu1  ;;  %v1343_v30 = vld [vmem:[%s1778_s6 + $0x8] sm:$0xff]  }
  0xd7   :  { %v1272_v33 = vpack.i.bf16 %v176_v32, %v173_v29  ;;  %v1342_v29 = vld [vmem:[%s1778_s6 + $0x88] sm:$0xff]   ;;  %v1345_v32 = vld [vmem:[%s1778_s6 + $0x80] sm:$0xff]  }
  0xd9   :  { %1283 = vrot.lane.b32.xlu1 %v1282_v2, %s1348_s10  ;;  %1273 = vrot.lane.b32.xlu0 %v1272_v33, %s1349_s13  ;;  %v1346_v2 = vld [vmem:[%s1778_s6] sm:$0xff]  }
  0xdd   :  { %314 = vperm.xlu0 %1265, %v39_v34  }
  0xe1   :  { %1278 = vrot.lane.b32.xlu0 %v1277_v35, %s1349_s13 }
 0x143   :  { %v1269_v38 = vpop.permute.xlu1 %1268 }
 0x144   :  { %v1271_v43 = vunpack.i.h.bf16 %v1269_v38  ;;  %v1270_v44 = vunpack.i.l.bf16 %v1269_v38 }
 0x14b   :  { %v1274_v39 = vpop.permute.xlu0 %1273  ;;  %v1174_v33 = vpop.f32.mrf.mxu1 }
 0x14c   :  { %v1276_v41 = vunpack.i.h.bf16 %v1274_v39  ;;  %v1275_v42 = vunpack.i.l.bf16 %v1274_v39 }
 0x14d   :  { %v1175_v34 = vpop.f32.mrf.mxu1 }
 0x14e   :  { %v360_v45 = vsel %vm358_vm3, %v106_v24, %v1276_v41  ;;  %v359_v46 = vsel %vm358_vm3, %v103_v19, %v1275_v42  ;;  %v1332_v19 = vld [vmem:[%s1778_s6 + $0x60] sm:$0xff]   ;;  %v1337_v24 = vld [vmem:[%s1778_s6 + $0x18] sm:$0xff]   ;;  %v1176_v38 = vadd.f32 %v1175_v34, %v1174_v33 }
 0x14f   :  { %v364_v48 = vsel %vm363_vm4, %v359_v46, %v1270_v44  ;;  %v365_v49 = vsel %vm363_vm4, %v360_v45, %v1271_v43  ;;  %1192 = vmatprep.subr.bf16.mxu1 %v1332_v19  ;;  %v1177_v35 = vpop.f32.mrf.mxu1  ;;  %v1091_v41 = vld [vmem:[%s1779_s7] ss:$0 sm:$0xff] }
 0x150   :  { %v371_v50 = vpack.c.bf16 %v365_v49, %v364_v48  ;;  %v1638_v51 = vpop.permute.xlu1 %319  ;;  %1193 = vmatpush3.bf16.msra.mxu1 %v1334_v21  ;;  %v665_v45 = vadd.f32 %v1176_v38, %v1091_v41 }
 0x151   :  { %v325_v52 = vmul.f32 %v1638_v51, %v301_v61  ;;  %v1178_v39 = vpop.f32.mrf.mxu1 }
 0x152   :  { %1122 = vmatprep.mubr.msk.bf16.mxu0 %vm623_vm5, %v371_v50  ;;  %v1179_v42 = vadd.f32 %v1178_v39, %v1177_v35 }
 0x153   :  { %712 = vmatmul.mubr.bf16.vlgmr.msra.gmra.mxu0 %v370_v6  ;;  %v1180_v44 = vpop.f32.mrf.mxu1 }
 0x154   :  { %v1284_v57 = vpop.permute.xlu1 %1283  ;;  %1243 = vmatpush3.bf16.msra.mxu0 %v1324_v11  ;;  %v668_v49 = vadd.f32 %v1179_v42, %v1091_v41 }
 0x155   :  { %v1286_v3 = vunpack.i.h.bf16 %v1284_v57  ;;  %v1285_v4 = vunpack.i.l.bf16 %v1284_v57  ;;  %1244 = vmatprep.subr.bf16.mxu0 %v1327_v14  ;;  %v1181_v55 = vpop.f32.mrf.mxu1 }
 0x158   :  { %v1640_v53 = vpop.permute.xlu0 %314  ;;  %1245 = vmatpush3.bf16.msra.mxu0 %v1327_v14 }
 0x159   :  { %v324_v5 = vmul.f32 %v1640_v53, %v298_v59 }
 0x15b   :  { %v374_v9 = vpack.c.bf16 %v325_v52, %v324_v5 }
 0x15c   :  { %v1279_v60 = vpop.permute.xlu0 %1278 }
 0x15d   :  { %v1281_v62 = vunpack.i.h.bf16 %v1279_v60  ;;  %v1280_v63 = vunpack.i.l.bf16 %v1279_v60 }
 0x15f   :  { %v362_v47 = vsel %vm358_vm3, %v1229_v22, %v1281_v62  ;;  %v361_v6 = vsel %vm358_vm3, %v1228_v17, %v1280_v63  ;;  %v1330_v17 = vld [vmem:[%s1778_s6 + $0xa8] sm:$0xff]   ;;  %v1335_v22 = vld [vmem:[%s1778_s6 + $0x58] sm:$0xff]   ;;  %v1183_v62 = vpop.f32.mrf.mxu1 }
 0x160   :  { %v367_v54 = vsel %vm363_vm4, %v362_v47, %v1286_v3  ;;  %v366_v7 = vsel %vm363_vm4, %v361_v6, %v1285_v4  ;;  %1246 = vmatprep.subr.bf16.mxu0 %v1330_v17  ;;  %1194 = vmatprep.subr.bf16.mxu1 %v1335_v22  ;;  %v1182_v3 = vadd.f32 %v1181_v55, %v1180_v44 }
 0x161   :  { %v375_v37 = vpack.c.bf16 %v367_v54, %v366_v7  ;;  %1247 = vmatpush3.bf16.msra.mxu0 %v1330_v17  ;;  %1195 = vmatpush3.bf16.msra.mxu1 %v1337_v24  ;;  %v1184_v4 = vpop.f32.mrf.mxu1 }
 0x162   :  { %1248 = vmatprep.subr.bf16.mxu0 %v1333_v20  ;;  %1196 = vmatprep.subr.bf16.mxu1 %v1338_v25  ;;  %v1185_v5 = vadd.f32 %v1184_v4, %v1183_v62  ;;  %v673_v47 = vadd.f32 %v1182_v3, %v1091_v41 }
 0x163   :  { %1123 = vmatprep.mubr.msk.bf16.mxu0 %vm623_vm5, %v375_v37 }
 0x164   :  { %720 = vmatmul.mubr.bf16.gmra.mxu0 %v374_v9  ;;  %v676_v40 = vadd.f32 %v1185_v5, %v1091_v41  ;;  %v1124_v41 = vld [vmem:[%s1780_s8] ss:$0 sm:$0xff] }
 0x165   :  { %1249 = vmatpush3.bf16.msra.mxu0 %v1333_v20  ;;  %1197 = vmatpush3.bf16.msra.mxu1 %v1340_v27 }
 0x166   :  { %1250 = vmatprep.subr.bf16.mxu0 %v1336_v23  ;;  %1198 = vmatprep.subr.bf16.mxu1 %v1341_v28 }
 0x169   :  { %1251 = vmatpush3.bf16.msra.mxu0 %v1336_v23  ;;  %1199 = vmatpush3.bf16.msra.mxu1 %v1343_v30 }
 0x16a   :  { %1252 = vmatprep.subr.bf16.mxu0 %v1339_v26  ;;  %1200 = vmatprep.subr.bf16.mxu1 %v1344_v31 }
 0x16d   :  { %1253 = vmatpush3.bf16.msra.mxu0 %v1339_v26  ;;  %1201 = vmatpush3.bf16.msra.mxu1 %v1346_v2 }
 0x16e   :  { %1254 = vmatprep.subr.bf16.mxu0 %v1342_v29 }
 0x171   :  { %1255 = vmatpush3.bf16.msra.mxu0 %v1342_v29 }
 0x172   :  { %1256 = vmatprep.subr.bf16.mxu0 %v1345_v32 }
 0x175   :  { %1257 = vmatpush3.bf16.msra.mxu0 %v1345_v32 }
 0x213   :  { %v713_v43 = vpop.f32.mrf.mxu0 }
 0x214   :  { %v714_v48 = vadd.f32 %v713_v43, %v665_v45 }
 0x215   :  { %v715_v46 = vpop.f32.mrf.mxu0 }
 0x216   :  { %v728_v60 = vmax.f32 %v714_v48, 0.0 }
 0x217   :  { %v716_v50 = vpop.f32.mrf.mxu0 }
 0x218   :  { %v717_v57 = vadd.f32 %v716_v50, %v668_v49  ;;  %v744_v37 = vrot.slane %v728_v60, 1  ;;  %v732_v17 = vrot.slane %v728_v60, 7 }
 0x219   :  { %v718_v59 = vpop.f32.mrf.mxu0 }
 0x21a   :  { %v729_v61 = vmax.f32 %v717_v57, 0.0 }
 0x21c   :  { %v757_v63 = vpack.c.bf16 %v729_v61, %v728_v60  ;;  %v745_v52 = vrot.slane %v729_v61, 1  ;;  %v733_v12 = vrot.slane %v729_v61, 7 }
 0x21e   :  { %993 = vmatprep.mubr.bf16.mxu1 %v757_v63  ;;  %v750_v15 = vsel %vm297_vm1, %v744_v37, %v745_v52  ;;  %v738_v22 = vsel %vm264_vm2, %v732_v17, %v733_v12 }
 0x21f   :  { %v752_v20 = vmul.f32 %v750_v15, %v1572_v58  ;;  %v741_v29 = vmul.f32 %v738_v22, %v1588_v0 }
 0x224   :  { %v721_v6 = vpop.f32.mrf.mxu0 }
 0x225   :  { %v722_v54 = vadd.f32 %v721_v6, %v673_v47 }
 0x226   :  { %v723_v7 = vpop.f32.mrf.mxu0 }
 0x227   :  { %v730_v9 = vmax.f32 %v722_v54, 0.0 }
 0x228   :  { %v724_v11 = vpop.f32.mrf.mxu0 }
 0x229   :  { %v746_v13 = vrot.slane %v730_v9, 1  ;;  %v725_v14 = vadd.f32 %v724_v11, %v676_v40  ;;  %v734_v31 = vrot.slane %v730_v9, 7 }
 0x22a   :  { %v726_v16 = vpop.f32.mrf.mxu0 }
 0x22b   :  { %v731_v18 = vmax.f32 %v725_v14, 0.0  ;;  %v749_v19 = vsel %vm297_vm1, %v745_v52, %v746_v13  ;;  %v737_v0 = vsel %vm264_vm2, %v733_v12, %v734_v31 }
 0x22c   :  { %v753_v21 = vmul.f32 %v749_v19, %v1590_v1 }
 0x22d   :  { %v735_v23 = vrot.slane %v731_v18, 7  ;;  %v747_v24 = vrot.slane %v731_v18, 1  ;;  %v760_v33 = vpack.c.bf16 %v731_v18, %v730_v9 }
 0x22e   :  { %v758_v25 = vpack.c.bf16 %v753_v21, %v752_v20 }
 0x22f   :  { %v739_v26 = vsel %vm264_vm2, %v735_v23, %v732_v17  ;;  %v748_v27 = vsel %vm297_vm1, %v746_v13, %v747_v24  ;;  %v751_v28 = vsel %vm297_vm1, %v747_v24, %v744_v37  ;;  %v736_v34 = vsel %vm264_vm2, %v734_v31, %v735_v23 }
 0x230   :  { %v740_v58 = vmul.f32 %v739_v26, %v1568_v56  ;;  %v754_v1 = vmul.f32 %v748_v27, %v1640_v53  ;;  %v755_v30 = vmul.f32 %v751_v28, %v1638_v51  ;;  %1258 = vmatprep.mubr.bf16.mxu0 %v758_v25  ;;  %v743_v56 = vmul.f32 %v736_v34, %v1601_v8 }
 0x231   :  { %v742_v53 = vmul.f32 %v737_v0, %v1605_v10 }
 0x232   :  { %v756_v32 = vpack.c.bf16 %v741_v29, %v740_v58  ;;  %v761_v2 = vpack.c.bf16 %v755_v30, %v754_v1 }
 0x233   :  { %v759_v35 = vpack.c.bf16 %v743_v56, %v742_v53 }
 0x234   :  { %994 = vmatmul.mubr.bf16.vlgmr.msra.gmra.mxu1 %v756_v32  ;;  %1259 = vmatmul.mubr.bf16.vlgmr.msra.gmra.mxu0 %v761_v2 }
 0x235   :  { %1001 = vmatprep.mubr.bf16.mxu1 %v760_v33 }
 0x23c   :  { %1002 = vmatmul.mubr.bf16.gmra.mxu1 %v759_v35 }
 0x2f4   :  { %v1202_v51 = vpop.f32.mrf.mxu1  ;;  %v1260_v38 = vpop.f32.mrf.mxu0 }
 0x2f6   :  { %v1203_v39 = vpop.f32.mrf.mxu1  ;;  %v1044_v42 = vpop.f32.mrf.mxu0 }
 0x2f7   :  { %v1204_v43 = vadd.f32 %v1203_v39, %v1202_v51 }
 0x2f8   :  { %v1205_v44 = vpop.f32.mrf.mxu1  ;;  %v1261_v46 = vpop.f32.mrf.mxu0 }
 0x2f9   :  { %v996_v45 = vadd.f32 %v1204_v43, %v1124_v41 }
 0x2fa   :  { %v1206_v36 = vpop.f32.mrf.mxu1  ;;  %v1047_v55 = vpop.f32.mrf.mxu0 }
 0x2fb   :  { %v1045_v48 = vadd.f32 %v1044_v42, %v996_v45  ;;  %v1207_v49 = vadd.f32 %v1206_v36, %v1205_v44 }
 0x2fc   :  { %v1208_v8 = vpop.f32.mrf.mxu1 }
 0x2fd   :  { %v1059_v50 = vmax.f32 %v1045_v48, 0.0  ;;  %v999_v10 = vadd.f32 %v1207_v49, %v1124_v41 }
 0x2fe   :  { %v1209_v57 = vpop.f32.mrf.mxu1 }
 0x2ff   :  { %1063 = vst [vmem:[%s1781_s9] sm:$0xff] %v1059_v50  ;;  %v1048_v59 = vadd.f32 %v1047_v55, %v999_v10  ;;  %v1210_v60 = vadd.f32 %v1209_v57, %v1208_v8 }
 0x300   :  { %v1211_v61 = vpop.f32.mrf.mxu1 }
 0x301   :  { %v1060_v62 = vmax.f32 %v1048_v59, 0.0  ;;  %v1004_v63 = vadd.f32 %v1210_v60, %v1124_v41 }
 0x302   :  { %v1212_v3 = vpop.f32.mrf.mxu1 }
 0x303   :  { %1064 = vst [vmem:[%s1781_s9 + $0x8] sm:$0xff] %v1060_v62  ;;  %v1053_v4 = vadd.f32 %v1260_v38, %v1004_v63  ;;  %v1213_v5 = vadd.f32 %v1212_v3, %v1211_v61 }
 0x305   :  { %v1061_v47 = vmax.f32 %v1053_v4, 0.0  ;;  %v1007_v6 = vadd.f32 %v1213_v5, %v1124_v41 }
 0x307   :  { %1065 = vst [vmem:[%s1781_s9 + $0x10] sm:$0xff] %v1061_v47  ;;  %v1056_v52 = vadd.f32 %v1261_v46, %v1007_v6 }
 0x309   :  { %v1062_v54 = vmax.f32 %v1056_v52, 0.0 }
 0x30b   :  { %1066 = vst [vmem:[%s1781_s9 + $0x18] sm:$0xff] %v1062_v54 }

</bundles_post_ra>
